<compile_context>
chip_gen: v6e
topology: v6e:2x2x1
jax: 0.10.0
libtpu: 0.0.40
codegen_flags: <defaults>
</compile_context>

<pallas_src>
import functools

import jax
import jax.numpy as jnp
from jax import lax
from jax.experimental import pallas as pl
from jax.experimental.pallas import tpu as pltpu

NEG_SLOPE = 0.1
_VMEM_CAP_BYTES = 48 * 1024 * 1024          # headroom under v7x's 64 MiB physical VMEM
_TILE_BUDGET_BYTES = int(0.75 * _VMEM_CAP_BYTES)


def _leaky_relu(v, slope=NEG_SLOPE):
    return jnp.where(v > 0, v, slope * v)


def _round_up(x, m):
    return (x + m - 1) // m * m


def _sublane(dtype):
    # Packed-sublane row granularity: 8 (4-byte), 16 (2-byte), 32 (1-byte).
    return max(8, 32 // jnp.dtype(dtype).itemsize)


# ---------------------------------------------------------------------------
# Kernels
# ---------------------------------------------------------------------------
def _sage_resident_kernel(x_ref, wt_ref, o_ref, *, valid_k):
    """grid=(node tiles,): whole K and the padded out dim stay resident.

    x_ref  : (tm, k_pad)       feature tile, native dtype
    wt_ref : (k_pad, out_pad)  pre-transposed weight; constant index_map ->
                               fetched from HBM once, resident afterwards
    o_ref  : (tm, out_pad)     output tile (lane-dense, 128-multiple)
    """
    x = x_ref[...]
    if valid_k < x.shape[1]:
        # The K block extends past the real feature dim; those lanes of x hold
        # uninitialized VMEM (wt's padded K rows are already zero), so mask
        # them to keep the contraction exact (0 * 0, never NaN * 0).
        col = lax.broadcasted_iota(jnp.int32, x.shape, 1)
        x = jnp.where(col < valid_k, x, jnp.zeros_like(x))
    x = _leaky_relu(x)
    y = lax.dot_general(
        x, wt_ref[...],
        dimension_numbers=(((1,), (0,)), ((), ())),
        preferred_element_type=jnp.float32,
    )
    o_ref[...] = _leaky_relu(y).astype(o_ref.dtype)


def _sage_ktiled_kernel(x_ref, wt_ref, o_ref, acc_ref):
    """Fallback for layers too large to keep the whole weight resident.
    grid=(node tiles, K tiles); f32 accumulator scratch, init/finalize on K."""
    k = pl.program_id(1)

    @pl.when(k == 0)
    def _init():
        acc_ref[...] = jnp.zeros_like(acc_ref)

    acc_ref[...] += lax.dot_general(
        _leaky_relu(x_ref[...]), wt_ref[...],
        dimension_numbers=(((1,), (0,)), ((), ())),
        preferred_element_type=jnp.float32,
    )

    @pl.when(k == pl.num_programs(1) - 1)
    def _finalize():
        o_ref[...] = _leaky_relu(acc_ref[...]).astype(o_ref.dtype)


# ---------------------------------------------------------------------------
# Wrapper
# ---------------------------------------------------------------------------
def sage_layer2(aggregate_feats, weight, neighs=None, *, tm=None, force_ktiled=False):
    """y = leaky_relu(leaky_relu(x, 0.1) @ W.T, 0.1); x:(n, K), W:(out, K)."""
    del neighs  # unused, mirrors the PyTorch forward signature
    x = aggregate_feats
    n, in_size = x.shape
    out_size, in_size_w = weight.shape
    assert in_size == in_size_w, "weight / feature inner dims disagree"

    dtype = x.dtype
    itemsize = jnp.dtype(dtype).itemsize
    sub = _sublane(dtype)

    k_pad = _round_up(in_size, 128)      # lane-aligned contraction dim
    out_pad = _round_up(out_size, 128)   # lane-dense (unmasked) output stores

    # One-time weight prep in the wrapper (tiny: out_size x in_size): transpose
    # to (K, out) so the kernel uses the standard (1,0) contraction, zero-pad
    # K and out.  Zero padding is numerically exact here.
    wt = weight.T
    if (k_pad, out_pad) != (in_size, out_size):
        wt = jnp.pad(wt, ((0, k_pad - in_size), (0, out_pad - out_size)))

    # Node tile.  x itself is never padded/copied: ragged node-edge blocks are
    # handled by Pallas (garbage edge rows only produce output rows >= n,
    # which are never written back).
    if tm is None:
        if n <= 128:
            tm = n                                        # single full-extent tile
        else:
            # >= 2 node tiles so the "parallel" axis can feed both v7x cores.
            tm = min(512, _round_up(pl.cdiv(n, 2), 128))
            tm = min(tm, n)
    else:
        tm = min(max(int(tm), 1), n)
    if tm < n:
        tm = _round_up(tm, sub)          # tiled path: rows must be sublane-aligned
        if tm >= n:
            tm = n
    n_tiles = pl.cdiv(n, tm)

    cost = pl.CostEstimate(
        flops=2 * n * k_pad * out_pad,
        transcendentals=0,
        bytes_accessed=(n * in_size + k_pad * out_pad + n * out_pad) * itemsize,
    )

    # -------- weight-resident path (preferred): collapse the K grid axis ------
    resident_bytes = (2 * tm * k_pad + 2 * k_pad * out_pad + 2 * tm * out_pad) * itemsize
    if (not force_ktiled) and resident_bytes <= _TILE_BUDGET_BYTES:
        vmem_limit = int(min(max(2 * resident_bytes, 32 * 1024 * 1024), _VMEM_CAP_BYTES))
        out_padded = pl.pallas_call(
            functools.partial(_sage_resident_kernel, valid_k=in_size),
            out_shape=jax.ShapeDtypeStruct((n, out_pad), dtype),
            grid_spec=pltpu.PrefetchScalarGridSpec(
                num_scalar_prefetch=0,
                grid=(n_tiles,),
                in_specs=[
                    pl.BlockSpec((tm, k_pad), lambda i: (i, 0)),
                    pl.BlockSpec((k_pad, out_pad), lambda i: (0, 0)),  # resident weight
                ],
                out_specs=pl.BlockSpec((tm, out_pad), lambda i: (i, 0)),
            ),
            compiler_params=pltpu.CompilerParams(
                dimension_semantics=("parallel",),
                vmem_limit_bytes=vmem_limit,
            ),
            cost_estimate=cost,
        )(x, wt)
    else:
        # -------- K-tiled fallback (very large layers) -------------------------
        # The contracted dim must be exactly zero-padded here, so x gets one
        # padded copy in HBM only when K is not 128-aligned.
        # TODO(synk): add an out-dim grid axis for very large out_size on v7x.
        tk = 128
        for cand in (512, 256, 128):
            if k_pad % cand == 0:
                tk = cand
                break

        def _tile_bytes(tm_):
            return ((2 * tm_ * tk + 2 * tk * out_pad + 2 * tm_ * out_pad) * itemsize
                    + tm_ * out_pad * 4)

        while tm > sub and _tile_bytes(tm) > _TILE_BUDGET_BYTES:
            tm = max(sub, _round_up(tm // 2, sub))
        n_tiles = pl.cdiv(n, tm)

        x_p = x if k_pad == in_size else jnp.pad(x, ((0, 0), (0, k_pad - in_size)))
        vmem_limit = int(min(max(2 * _tile_bytes(tm), 32 * 1024 * 1024), _VMEM_CAP_BYTES))
        out_padded = pl.pallas_call(
            _sage_ktiled_kernel,
            out_shape=jax.ShapeDtypeStruct((n, out_pad), dtype),
            grid_spec=pltpu.PrefetchScalarGridSpec(
                num_scalar_prefetch=0,
                grid=(n_tiles, k_pad // tk),
                in_specs=[
                    pl.BlockSpec((tm, tk), lambda i, k: (i, k)),
                    pl.BlockSpec((tk, out_pad), lambda i, k: (k, 0)),
                ],
                out_specs=pl.BlockSpec((tm, out_pad), lambda i, k: (i, 0)),
                scratch_shapes=[pltpu.VMEM((tm, out_pad), jnp.float32)],
            ),
            compiler_params=pltpu.CompilerParams(
                dimension_semantics=("parallel", "arbitrary"),
                vmem_limit_bytes=vmem_limit,
            ),
            cost_estimate=cost,
        )(x_p, wt)

    return out_padded if out_pad == out_size else out_padded[:, :out_size]


# ---------------------------------------------------------------------------
# Reference / init helpers
# ---------------------------------------------------------------------------
def xavier_uniform(key, shape, dtype=jnp.float32):
    """Matches torch.nn.init.xavier_uniform_ for a 2-D (fan_out, fan_in) weight."""
    fan_out, fan_in = shape
    bound = jnp.sqrt(6.0 / (fan_in + fan_out))
    return jax.random.uniform(key, shape, dtype=dtype, minval=-bound, maxval=bound)


def sage_layer2_ref(aggregate_feats, weight):
    """Pure-JAX reference of the PyTorch forward pass (f32 math)."""
    xf = _leaky_relu(aggregate_feats.astype(jnp.float32))
    wf = weight.astype(jnp.float32)
    return _leaky_relu(wf @ xf.T).T


if __name__ == "__main__":
    key = jax.random.PRNGKey(0)

    # --- Test 1: module-default-ish sizes (f32, resident path, masked K tail) -
    n1, in1, out1 = 8, 32, 32
    k_x, k_w, key = jax.random.split(key, 3)
    x1 = jax.random.normal(k_x, (n1, in1), dtype=jnp.float32)
    w1 = xavier_uniform(k_w, (out1, in1))
    out_1 = jax.block_until_ready(sage_layer2(x1, w1))
    ref_1 = sage_layer2_ref(x1, w1)
    assert out_1.shape == (n1, out1)
    assert jnp.allclose(out_1, ref_1, atol=1e-4, rtol=1e-4)

    # --- Test 2: ragged node tiles + non-aligned K/out (f32, resident path) ---
    n2, in2, out2 = 37, 300, 48
    k_x2, k_w2, key = jax.random.split(key, 3)
    x2 = jax.random.normal(k_x2, (n2, in2), dtype=jnp.float32)
    w2 = xavier_uniform(k_w2, (out2, in2))
    out_2 = jax.block_until_ready(sage_layer2(x2, w2, tm=16))  # 3 node tiles, last ragged
    ref_2 = sage_layer2_ref(x2, w2)
    assert out_2.shape == (n2, out2)
    assert jnp.allclose(out_2, ref_2, atol=1e-4, rtol=1e-4)

    # --- Test 3: bf16 MXU fast path (looser tolerance: bf16 rounding) ---------
    x_bf = x2.astype(jnp.bfloat16)
    w_bf = w2.astype(jnp.bfloat16)
    out_bf = jax.block_until_ready(sage_layer2(x_bf, w_bf))
    ref_bf = sage_layer2_ref(x_bf, w_bf)
    assert out_bf.shape == (n2, out2)
    assert jnp.allclose(out_bf.astype(jnp.float32), ref_bf, atol=5e-2, rtol=5e-2)

    # --- Test 4: K-tiled fallback path (accumulator + pl.when init/finalize) --
    n4, in4, out4 = 20, 300, 48
    k_x4, k_w4, key = jax.random.split(key, 3)
    x4 = jax.random.normal(k_x4, (n4, in4), dtype=jnp.float32)
    w4 = xavier_uniform(k_w4, (out4, in4))
    out_4 = jax.block_until_ready(sage_layer2(x4, w4, tm=16, force_ktiled=True))
    ref_4 = sage_layer2_ref(x4, w4)
    assert out_4.shape == (n4, out4)
    assert jnp.allclose(out_4, ref_4, atol=1e-4, rtol=1e-4)

    print("KERNEL_OK")
</pallas_src>

<mosaic_0001>
module attributes {stable_mosaic.version = 11 : i64} {
  func.func @_sage_resident_kernel(%arg0: i32, %arg1: memref<8x128xf32, #tpu.memory_space<vmem>>, %arg2: memref<128x128xf32, #tpu.memory_space<vmem>>, %arg3: memref<8x128xf32, #tpu.memory_space<vmem>>) attributes {dimension_semantics = [#tpu.dimension_semantics<parallel>], iteration_bounds = array<i64: 1>, scalar_prefetch = 0 : i64, scratch_operands = 0 : i64, tpu.core_type = #tpu.core_type<tc>, window_params = [{transform_indices = @transform_0, window_bounds = array<i64: 8, 128>}, {pipeline_mode = #tpu.pipeline_mode<synchronous>, transform_indices = @transform_1, window_bounds = array<i64: 128, 128>}, {transform_indices = @transform_2, window_bounds = array<i64: 8, 128>}]} {
    %c0 = arith.constant 0 : index
    %c0_0 = arith.constant 0 : index
    %0 = vector.load %arg1[%c0, %c0_0] : memref<8x128xf32, #tpu.memory_space<vmem>>, vector<8x128xf32>
    %1 = tpu.iota {dimensions = array<i32: 1>} : vector<8x128xi32>
    %c32_i32 = arith.constant 32 : i32
    %2 = vector.broadcast %c32_i32 : i32 to vector<8x128xi32>
    %3 = arith.cmpi slt, %1, %2 : vector<8x128xi32>
    %cst = arith.constant 0.000000e+00 : f32
    %4 = vector.broadcast %cst : f32 to vector<8x128xf32>
    %5 = arith.select %3, %0, %4 : vector<8x128xi1>, vector<8x128xf32>
    %cst_1 = arith.constant 0.000000e+00 : f32
    %6 = vector.broadcast %cst_1 : f32 to vector<8x128xf32>
    %7 = arith.cmpf ogt, %5, %6 : vector<8x128xf32>
    %cst_2 = arith.constant 1.000000e-01 : f32
    %8 = vector.broadcast %cst_2 : f32 to vector<8x128xf32>
    %9 = arith.mulf %8, %5 : vector<8x128xf32>
    %10 = arith.select %7, %5, %9 : vector<8x128xi1>, vector<8x128xf32>
    %c0_3 = arith.constant 0 : index
    %c0_4 = arith.constant 0 : index
    %11 = vector.load %arg2[%c0_3, %c0_4] : memref<128x128xf32, #tpu.memory_space<vmem>>, vector<128x128xf32>
    %cst_5 = arith.constant dense<0.000000e+00> : vector<8x128xf32>
    %12 = tpu.matmul %10, %11, %cst_5 {dimension_numbers = #tpu.dot_dimension_numbers<[1], [0], [0], [1], [0, 0, 1, 1], [], []>} : vector<8x128xf32>, vector<128x128xf32>, vector<8x128xf32> -> vector<8x128xf32>
    %cst_6 = arith.constant 0.000000e+00 : f32
    %13 = vector.broadcast %cst_6 : f32 to vector<8x128xf32>
    %14 = arith.cmpf ogt, %12, %13 : vector<8x128xf32>
    %cst_7 = arith.constant 1.000000e-01 : f32
    %15 = vector.broadcast %cst_7 : f32 to vector<8x128xf32>
    %16 = arith.mulf %15, %12 : vector<8x128xf32>
    %17 = arith.select %14, %12, %16 : vector<8x128xi1>, vector<8x128xf32>
    %c0_8 = arith.constant 0 : index
    %c0_9 = arith.constant 0 : index
    %18 = vector.load %arg3[%c0_8, %c0_9] : memref<8x128xf32, #tpu.memory_space<vmem>>, vector<8x128xf32>
    tpu.vector_store %arg3[%c0_8, %c0_9], %17 {strides = array<i32>} : memref<8x128xf32, #tpu.memory_space<vmem>>, vector<8x128xf32>,
    return
  }
  func.func @transform_0(%arg0: i32) -> (i32, i32) {
    %c0_i32 = arith.constant 0 : i32
    %c0_i32_0 = arith.constant 0 : i32
    return %arg0, %c0_i32 : i32, i32
  }
  func.func @transform_1(%arg0: i32) -> (i32, i32) {
    %c0_i32 = arith.constant 0 : i32
    %c0_i32_0 = arith.constant 0 : i32
    %c0_i32_1 = arith.constant 0 : i32
    return %c0_i32, %c0_i32_0 : i32, i32
  }
  func.func @transform_2(%arg0: i32) -> (i32, i32) {
    %c0_i32 = arith.constant 0 : i32
    %c0_i32_0 = arith.constant 0 : i32
    return %arg0, %c0_i32 : i32, i32
  }
}

</mosaic_0001>

<bundles_post_ra>
// kernel: tpu_custom_call.1
= control target key start
LH: loop header
LB: loop body
LE: loop exit
PB: predicated region body
PF: predicated region fallthrough
CT: control target
= control target key end

     0   :  { %7 = vsyncpa [#allocation3], 0  ;;  %s308_s0 = inlined_call_operand.hbm [shape: f32[8,32], index: 0, kind: input, shape index: {}]   ;;  %s309_s1 = inlined_call_operand.hbm [shape: f32[128,128], index: 1, kind: input, shape index: {}]   ;;  %s310_s2 = inlined_call_operand.hbm [shape: f32[8,128], index: 2, kind: output, shape index: {}]  }
   0x1   :  { %8 = vsyncpa [#allocation6], 0 }
   0x2   :  { %9 = vsyncpa [#allocation4], 0  ;;  %s277_s9 = smov [#allocation2]   ;;  %s278_s11 = smov [#allocation5]  }
   0x3   :  { %s16_s10 = sshll.u32 %s277_s9, 4  ;;  %s25_s12 = sshll.u32 %s278_s11, 4  ;;  %s17_s10 = int_to_ptr.vmem [resolvable:$true] %s16_s10  ;;  %s26_s12 = int_to_ptr.vmem [resolvable:$true] %s25_s12 }
   0x4   :  { %s219_s13 = scalar_lea.vmem %s17_s10, 128  ;;  %p224_p1 = scmp.lt.s32.totalorder %s17_s10, %s17_s10 }
   0x5   :  { %p220_p0 = scmp.ne.s32.totalorder %s17_s10, %s219_s13  ;;  %p225_p2 = scmp.lt.s32.totalorder %s219_s13, %s219_s13 }
   0x7   :  { %p226_p3 = por %p225_p2, %p224_p1 }
   0x9   :  { %p227_p4 = pnand %p226_p3, %p220_p0 }
   0xb   :  { %230 = shalt.err (!%p227_p4)
}
   0xc   :  { %19 = dma.hbm_to_vmem [thread:$0]  %s308_s0, 128, %s17_s10, [#allocation3]  }
   0xd   :  { %s239_s16 = scalar_lea.vmem %s26_s12, 2048  ;;  %p244_p6 = scmp.lt.s32.totalorder %s26_s12, %s26_s12 }
   0xe   :  { %p240_p5 = scmp.ne.s32.totalorder %s26_s12, %s239_s16  ;;  %p245_p7 = scmp.lt.s32.totalorder %s239_s16, %s239_s16 }
  0x10   :  { %p246_p8 = por %p245_p7, %p244_p6 }
  0x12   :  { %p247_p9 = pnand %p246_p8, %p240_p5 }
  0x14   :  { %250 = shalt.err (!%p247_p9)
}
  0x15   :  { %s279_s17 = smov 128   ;;  %s280_s18 = smov 8  }
  0x16   :  { %31 = dma.hbm_to_vmem [thread:$0]  %s309_s1, 2048, %s26_s12, [#allocation6], %s279_s17, %s279_s17, %s280_s18  }
  0x17   :  { %271 = dma.done.wait [#allocation3], 128  }
  0x18   :  { %272 = vsyncadd [#allocation3], 4294967168 }
  0x19   :  { %273 = dma.done.wait [#allocation6], 2048  }
  0x1a   :  { %274 = vsyncadd [#allocation6], 4294965248  ;;  %v281_v0 = vmov 0.0   ;;  %vm282_vm0 = vmmov 0   ;;  %v61_v1 = vld [vmem:[#allocation5 + $0x78] sm:$0xff]  ;;  %v60_v2 = vld [vmem:[#allocation5 + $0x70] sm:$0xff]  ;;  %v39_v8 = vlaneseq }
  0x1b   :  { %169 = vmatprep.subr.mxu0 %v281_v0  ;;  %201 = vmatprep.mubr.msk.f32.mxu0 %vm282_vm0, %v281_v0  ;;  %v59_v3 = vld [vmem:[#allocation5 + $0x68] sm:$0xff]  ;;  %v58_v4 = vld [vmem:[#allocation5 + $0x60] sm:$0xff]  ;;  %v57_v5 = vld [vmem:[#allocation5 + $0x58] sm:$0xff]  ;;  %s283_s0 = smov [#allocation7]  }
  0x1c   :  { %170 = vmatpush3.msra.mxu0 %v61_v1  ;;  %v56_v6 = vld [vmem:[#allocation5 + $0x50] sm:$0xff]  ;;  %v55_v7 = vld [vmem:[#allocation5 + $0x48] sm:$0xff]  ;;  %v54_v9 = vld [vmem:[#allocation5 + $0x40] sm:$0xff]  ;;  %v40_v11 = vand.u32 127, %v39_v8  ;;  %s142_s1 = sshll.u32 %s283_s0, 4  ;;  %s143_s1 = int_to_ptr.vmem [resolvable:$true] %s142_s1 }
  0x1d   :  { %171 = vmatprep.subr.mxu0 %v281_v0  ;;  %v53_v10 = vld [vmem:[#allocation5 + $0x38] sm:$0xff]  ;;  %v52_v12 = vld [vmem:[#allocation5 + $0x30] sm:$0xff]  ;;  %v51_v13 = vld [vmem:[#allocation5 + $0x28] sm:$0xff]  ;;  %s251_s21 = scalar_lea.vmem %s143_s1, 128  ;;  %p256_p11 = scmp.lt.s32.totalorder %s143_s1, %s143_s1 }
  0x1e   :  { %172 = vmatpush3.msra.mxu0 %v60_v2  ;;  %v38_v14 = vld [vmem:[#allocation2] sm:$0xff]  ;;  %vm41_vm1 = vcmp.lt.s32.totalorder %v40_v11, 32  ;;  %v50_v15 = vld [vmem:[#allocation5 + $0x20] sm:$0xff]  ;;  %v48_v18 = vld [vmem:[#allocation5 + $0x10] sm:$0xff]  ;;  %p252_p10 = scmp.ne.s32.totalorder %s143_s1, %s251_s21  ;;  %p257_p12 = scmp.lt.s32.totalorder %s251_s21, %s251_s21 }
  0x1f   :  { %173 = vmatprep.subr.mxu0 %v281_v0  ;;  %v49_v16 = vld [vmem:[#allocation5 + $0x18] sm:$0xff]  ;;  %v42_v17 = vsel %vm41_vm1, %v38_v14, 0.0  ;;  %v47_v20 = vld [vmem:[#allocation5 + $0x8] sm:$0xff]  ;;  %v46_v21 = vld [vmem:[#allocation5] sm:$0xff] }
  0x20   :  { %174 = vmatpush3.msra.mxu0 %v59_v3  ;;  %v44_v19 = vmul.f32 0.1, %v42_v17  ;;  %vm43_vm2 = vcmp.gt.f32.partialorder %v42_v17, 0.0  ;;  %p258_p13 = por %p257_p12, %p256_p11 }
  0x21   :  { %175 = vmatprep.subr.mxu0 %v281_v0 }
  0x22   :  { %176 = vmatpush3.msra.mxu0 %v58_v4  ;;  %v45_v22 = vsel %vm43_vm2, %v42_v17, %v44_v19  ;;  %p259_p0 = pnand %p258_p13, %p252_p10 }
  0x23   :  { %177 = vmatprep.subr.mxu0 %v281_v0 }
  0x24   :  { %178 = vmatpush3.msra.mxu0 %v57_v5 }
  0x25   :  { %179 = vmatprep.subr.mxu0 %v281_v0 }
  0x26   :  { %180 = vmatpush3.msra.mxu0 %v56_v6 }
  0x27   :  { %181 = vmatprep.subr.mxu0 %v281_v0 }
  0x28   :  { %182 = vmatpush3.msra.mxu0 %v55_v7 }
  0x29   :  { %183 = vmatprep.subr.mxu0 %v281_v0 }
  0x2a   :  { %184 = vmatpush3.msra.mxu0 %v54_v9 }
  0x2b   :  { %185 = vmatprep.subr.mxu0 %v281_v0 }
  0x2c   :  { %186 = vmatpush3.msra.mxu0 %v53_v10 }
  0x2d   :  { %187 = vmatprep.subr.mxu0 %v281_v0 }
  0x2e   :  { %188 = vmatpush3.msra.mxu0 %v52_v12 }
  0x2f   :  { %189 = vmatprep.subr.mxu0 %v281_v0 }
  0x30   :  { %190 = vmatpush3.msra.mxu0 %v51_v13 }
  0x31   :  { %191 = vmatprep.subr.mxu0 %v281_v0 }
  0x32   :  { %192 = vmatpush3.msra.mxu0 %v50_v15 }
  0x33   :  { %193 = vmatprep.subr.mxu0 %v281_v0 }
  0x34   :  { %194 = vmatpush3.msra.mxu0 %v49_v16 }
  0x35   :  { %195 = vmatprep.subr.mxu0 %v281_v0 }
  0x36   :  { %196 = vmatpush3.msra.mxu0 %v48_v18 }
  0x37   :  { %197 = vmatprep.subr.mxu0 %v281_v0 }
  0x38   :  { %198 = vmatpush3.msra.mxu0 %v47_v20 }
  0x39   :  { %199 = vmatprep.subr.mxu0 %v281_v0 }
  0x3a   :  { %200 = vmatpush3.msra.mxu0 %v46_v21 }
  0x3b   :  { %202 = vmatmul.mubr.f32.vlgmr.msra.gmra.mxu0 %v45_v22 }
  0xfb   :  { %v128_v23 = vpop.f32.mrf.mxu0 }
  0xfc   :  { %vm132_vm3 = vcmp.gt.f32.partialorder %v128_v23, 0.0  ;;  %v133_v24 = vmul.f32 0.1, %v128_v23 }
  0xfd   :  { %v203_v25 = vpop.f32.mrf.mxu0 }
  0xfe   :  { %v134_v26 = vsel %vm132_vm3, %v128_v23, %v133_v24 }
  0xff   :  { %135 = vst [vmem:[#allocation7] sm:$0xff] %v134_v26 }
 0x100   :  { %262 = shalt.err (!%p259_p0)
}
 0x101   :  { %145 = dma.vmem_to_hbm [thread:$0]  %s143_s1, 128, %s310_s2, [#allocation4]  }
 0x102   :  { %275 = dma.done.wait [#allocation4], 128  }
 0x103   :  { %276 = vsyncadd [#allocation4], 4294967168 }
 0x104   :  { %149 = vsyncpa [#allocation3], 1 }
 0x105   :  { %150 = vsyncpa [#allocation6], 1 }
 0x106   :  { %151 = vsyncpa [#allocation4], 1 }

</bundles_post_ra>
